<compile_context>
chip_gen: v5e
topology: v5e:2x2
jax: 0.10.0
libtpu: 0.0.40
codegen_flags: <defaults>
</compile_context>

<pallas_src>
from functools import partial

import jax
import jax.numpy as jnp
from jax.experimental import pallas as pl
from jax.experimental.pallas import tpu as pltpu


def _round_up(x, m):
    return ((x + m - 1) // m) * m


def _pick_tile(dim, max_tile, *, align=128, min_tiles=1):
    """Pick a tile size (multiple of `align`, <= max_tile) and the padded dim.

    If min_tiles > 1 and the dim would otherwise be a single tile, the tile is
    shrunk so the grid axis has >= min_tiles steps (v7x dual-TensorCore).
    """
    dim_aligned = _round_up(dim, align)
    tile = min(max_tile, dim_aligned)
    if min_tiles > 1 and dim_aligned // tile < min_tiles and dim_aligned > align:
        tile = max(align, _round_up(dim_aligned // min_tiles, align))
    padded = _round_up(dim, tile)
    return tile, padded


def _matmul_kernel(l_ref, r_ref, o_ref, *, tk):
    """One (B, tn) output tile, reduced over the K grid axis (axis 1).

    l_ref : (B, K_pad)  -- whole lhs, resident in VMEM across the grid.
    r_ref : (tk, tn)    -- streamed operator tile.
    o_ref : (B, tn)     -- f32 output tile; doubles as the accumulator (its
                           block index is constant across the k axis).
    """
    k = pl.program_id(1)

    @pl.when(k == 0)
    def _init():
        o_ref[...] = jnp.zeros_like(o_ref)

    start = pl.multiple_of(k * tk, 128)
    o_ref[...] += jnp.dot(
        l_ref[:, pl.ds(start, tk)],
        r_ref[...],
        preferred_element_type=jnp.float32,
    )


def _pallas_matmul(lhs_p, rhs_p, *, tk_e, tn_e, out_n):
    """Computes lhs_p @ rhs_p (both already padded to tile multiples).

    lhs_p: (B, K_pad)      -- small batch of row vectors (resident in VMEM).
    rhs_p: (K_pad, N_pad)  -- dense operator, streamed in (tk_e, tn_e) tiles.
    Returns (B, out_n) float32, lane-dense output (N on the lane axis).
    """
    B, K_pad = lhs_p.shape
    K2, N_pad = rhs_p.shape
    assert K_pad == K2, (lhs_p.shape, rhs_p.shape)
    assert K_pad % tk_e == 0 and N_pad % tn_e == 0

    grid = (N_pad // tn_e, K_pad // tk_e)

    rhs_item = rhs_p.dtype.itemsize
    lhs_item = lhs_p.dtype.itemsize
    # Conservative VMEM budget: double-buffered rhs tile + resident lhs + out
    # tile, with 1.5x headroom.  Capped at 64 MiB (v7x physical VMEM).
    vmem_needed = (2 * tk_e * tn_e * rhs_item
                   + 2 * B * K_pad * lhs_item
                   + 2 * B * tn_e * 4)
    vmem_limit = max(32 << 20, min(64 << 20, (vmem_needed * 3) // 2))

    out = pl.pallas_call(
        partial(_matmul_kernel, tk=tk_e),
        out_shape=jax.ShapeDtypeStruct((B, N_pad), jnp.float32),
        grid_spec=pltpu.PrefetchScalarGridSpec(
            num_scalar_prefetch=0,
            grid=grid,
            in_specs=[
                # lhs: constant block index -> fetched once, resident in VMEM.
                pl.BlockSpec((B, K_pad), lambda j, k: (0, 0)),
                # rhs: streamed operator tiles.
                pl.BlockSpec((tk_e, tn_e), lambda j, k: (k, j)),
            ],
            out_specs=pl.BlockSpec((B, tn_e), lambda j, k: (0, j)),
        ),
        compiler_params=pltpu.CompilerParams(
            # output-tile axis parallel (v7x dual TC), reduction axis arbitrary
            dimension_semantics=("parallel", "arbitrary"),
            vmem_limit_bytes=int(vmem_limit),
        ),
        cost_estimate=pl.CostEstimate(
            flops=2 * B * K_pad * N_pad,
            transcendentals=0,
            bytes_accessed=(K_pad * N_pad * rhs_item     # operator streamed once
                            + B * K_pad * lhs_item       # lhs fetched once
                            + B * N_pad * 4),            # output written once
        ),
    )(lhs_p, rhs_p)

    if out_n != N_pad:
        out = out[:, :out_n]
    return out


class LinearOp:
    """JAX/Pallas port of dprox.algo.lp.utils.LinearOp."""

    def __init__(self, A_fun, AT_fun, shape):
        self.A_fun = A_fun
        self.AT_fun = AT_fun
        self.shape = shape

    def forward(self, x):
        return self.A_fun(x)

    def adjoint(self, x):
        return self.AT_fun(x)

    def __matmul__(self, x):
        return self.forward(x)

    def __call__(self, x):
        return self.forward(x)

    def transpose(self):
        return LinearOp(
            A_fun=self.AT_fun,
            AT_fun=self.A_fun,
            shape=(self.shape[1], self.shape[0]),
        )

    T = property(transpose)

    def clone(self):
        # TODO(synk): the torch original deep-copies A_fun and (buggily) reuses
        # it for AT_fun; our functions are pure, so keep both intact instead.
        return LinearOp(self.A_fun, self.AT_fun, self.shape)


def make_dense_linear_op(A, *, tk=1024, tn=2048, operator_dtype=None,
                         min_pallas_bytes=2 << 20):
    """Builds a LinearOp backed by the Pallas matmul kernel for a dense A.

    operator_dtype: optionally store/stream A in a narrower dtype (e.g.
        jnp.bfloat16) -- accumulation stays f32.
        # TODO(synk): validate LP solver tolerances before enabling bf16.
    min_pallas_bytes: operators smaller than this fall back to plain jnp.dot
        (pallas_call dispatch + glue would dominate).
    """
    A = jnp.asarray(A)
    M, N = A.shape
    op_dtype = jnp.dtype(operator_dtype) if operator_dtype is not None else A.dtype

    # --- small-problem fallback -------------------------------------------
    if M * N * A.dtype.itemsize < min_pallas_bytes:
        AT = jnp.transpose(A)
        return LinearOp(lambda x: jnp.dot(A, x),
                        lambda y: jnp.dot(AT, y),
                        shape=(M, N))

    # --- Pallas path -------------------------------------------------------
    tk = _round_up(max(int(tk), 128), 128)
    tn = _round_up(max(int(tn), 128), 128)

    # forward: y.T = x.T @ A.T   -> reduction axis = N, output axis = M
    tk_f, Kpad_f = _pick_tile(N, tk, min_tiles=1)
    tn_f, Npad_f = _pick_tile(M, tn, min_tiles=2)
    # adjoint: z.T = y.T @ A     -> reduction axis = M, output axis = N
    tk_a, Kpad_a = _pick_tile(M, tk, min_tiles=1)
    tn_a, Npad_a = _pick_tile(N, tn, min_tiles=2)

    # Pre-pad BOTH operator orientations once (hoisted out of the call path);
    # only the padded copies are retained.
    AT_pad = jnp.pad(jnp.transpose(A),
                     ((0, Kpad_f - N), (0, Npad_f - M))).astype(op_dtype)
    A_pad = jnp.pad(A,
                    ((0, Kpad_a - M), (0, Npad_a - N))).astype(op_dtype)

    def A_fun(x):
        # y = A @ x, computed lane-dense as y.T = x.T @ A.T : (B,N)@(N,M)->(B,M)
        lhs = jnp.transpose(x).astype(op_dtype)
        if Kpad_f != N:
            lhs = jnp.pad(lhs, ((0, 0), (0, Kpad_f - N)))
        yT = _pallas_matmul(lhs, AT_pad, tk_e=tk_f, tn_e=tn_f, out_n=M)
        return jnp.transpose(yT).astype(x.dtype)

    def AT_fun(y):
        # z = A.T @ y, computed lane-dense as z.T = y.T @ A : (B,M)@(M,N)->(B,N)
        lhs = jnp.transpose(y).astype(op_dtype)
        if Kpad_a != M:
            lhs = jnp.pad(lhs, ((0, 0), (0, Kpad_a - M)))
        zT = _pallas_matmul(lhs, A_pad, tk_e=tk_a, tn_e=tn_a, out_n=N)
        return jnp.transpose(zT).astype(y.dtype)

    return LinearOp(A_fun, AT_fun, shape=(M, N))


if __name__ == "__main__":
    # Small, deterministic problem: A is (M, N) = (64, 256), x is (N, B) = (256, 8).
    M, N, B = 64, 256, 8
    key = jax.random.PRNGKey(0)
    k_a, k_x = jax.random.split(key)
    A = jax.random.normal(k_a, (M, N), dtype=jnp.float32)
    x = jax.random.normal(k_x, (N, B), dtype=jnp.float32)

    # Force the Pallas path at these small demo shapes (the default would take
    # the jnp.dot fallback); small tiles so the grid has multiple steps.
    op = make_dense_linear_op(A, tk=128, tn=128, min_pallas_bytes=0)

    # forward: op @ x == A @ x
    y = jax.block_until_ready(op @ x)
    # adjoint / transpose: op.T @ y == A.T @ y
    z = jax.block_until_ready(op.T @ y)
    # explicit adjoint API
    z2 = jax.block_until_ready(op.adjoint(y))

    # Verify against plain-JAX reference.
    y_ref = A @ x
    z_ref = A.T @ y_ref
    assert y.shape == (M, B) and z.shape == (N, B)
    assert jnp.allclose(y, y_ref, atol=1e-4, rtol=1e-4)
    assert jnp.allclose(z, z_ref, atol=1e-3, rtol=1e-3)
    assert jnp.allclose(z2, z_ref, atol=1e-3, rtol=1e-3)

    # Also exercise the small-problem fallback path (default thresholds).
    op_small = make_dense_linear_op(A)
    y_small = jax.block_until_ready(op_small @ x)
    assert jnp.allclose(y_small, y_ref, atol=1e-4, rtol=1e-4)

    print("KERNEL_OK")
</pallas_src>

<mosaic_0001>
module attributes {stable_mosaic.version = 11 : i64} {
  func.func @_matmul_kernel(%arg0: i32, %arg1: i32, %arg2: memref<8x256xf32, #tpu.memory_space<vmem>>, %arg3: memref<128x128xf32, #tpu.memory_space<vmem>>, %arg4: memref<8x128xf32, #tpu.memory_space<vmem>>) attributes {dimension_semantics = [#tpu.dimension_semantics<parallel>, #tpu.dimension_semantics<arbitrary>], iteration_bounds = array<i64: 1, 2>, scalar_prefetch = 0 : i64, scratch_operands = 0 : i64, tpu.core_type = #tpu.core_type<tc>, window_params = [{pipeline_mode = #tpu.pipeline_mode<synchronous>, transform_indices = @transform_0, window_bounds = array<i64: 8, 256>}, {transform_indices = @transform_1, window_bounds = array<i64: 128, 128>}, {transform_indices = @transform_2, window_bounds = array<i64: 8, 128>}]} {
    %c0_i32 = arith.constant 0 : i32
    %0 = arith.cmpi eq, %arg1, %c0_i32 : i32
    %1 = arith.extui %0 : i1 to i32
    %c0_i32_0 = arith.constant 0 : i32
    %2 = arith.cmpi ne, %1, %c0_i32_0 : i32
    scf.if %2 {
      %cst_7 = arith.constant 0.000000e+00 : f32
      %12 = vector.broadcast %cst_7 : f32 to vector<8x128xf32>
      %c0_8 = arith.constant 0 : index
      %c0_9 = arith.constant 0 : index
      %13 = vector.load %arg4[%c0_8, %c0_9] : memref<8x128xf32, #tpu.memory_space<vmem>>, vector<8x128xf32>
      tpu.vector_store %arg4[%c0_8, %c0_9], %12 {strides = array<i32>} : memref<8x128xf32, #tpu.memory_space<vmem>>, vector<8x128xf32>,
    } else {
    }
    %c128_i32 = arith.constant 128 : i32
    %3 = arith.muli %arg1, %c128_i32 : i32
    %4 = tpu.assume_multiple %3, 128 : i32
    %c0 = arith.constant 0 : index
    %c0_1 = arith.constant 0 : index
    %5 = vector.load %arg4[%c0, %c0_1] : memref<8x128xf32, #tpu.memory_space<vmem>>, vector<8x128xf32>
    %c0_2 = arith.constant 0 : index
    %6 = arith.index_cast %4 : i32 to index
    %7 = vector.load %arg2[%c0_2, %6] : memref<8x256xf32, #tpu.memory_space<vmem>>, vector<8x128xf32>
    %c0_3 = arith.constant 0 : index
    %c0_4 = arith.constant 0 : index
    %8 = vector.load %arg3[%c0_3, %c0_4] : memref<128x128xf32, #tpu.memory_space<vmem>>, vector<128x128xf32>
    %cst = arith.constant dense<0.000000e+00> : vector<8x128xf32>
    %9 = tpu.matmul %7, %8, %cst {dimension_numbers = #tpu.dot_dimension_numbers<[1], [0], [0], [1], [0, 0, 1, 1], [], []>} : vector<8x128xf32>, vector<128x128xf32>, vector<8x128xf32> -> vector<8x128xf32>
    %10 = arith.addf %5, %9 : vector<8x128xf32>
    %c0_5 = arith.constant 0 : index
    %c0_6 = arith.constant 0 : index
    %11 = vector.load %arg4[%c0_5, %c0_6] : memref<8x128xf32, #tpu.memory_space<vmem>>, vector<8x128xf32>
    tpu.vector_store %arg4[%c0_5, %c0_6], %10 {strides = array<i32>} : memref<8x128xf32, #tpu.memory_space<vmem>>, vector<8x128xf32>,
    return
  }
  func.func @transform_0(%arg0: i32, %arg1: i32) -> (i32, i32) {
    %c0_i32 = arith.constant 0 : i32
    %c0_i32_0 = arith.constant 0 : i32
    %c0_i32_1 = arith.constant 0 : i32
    return %c0_i32, %c0_i32_0 : i32, i32
  }
  func.func @transform_1(%arg0: i32, %arg1: i32) -> (i32, i32) {
    %c0_i32 = arith.constant 0 : i32
    return %arg1, %arg0 : i32, i32
  }
  func.func @transform_2(%arg0: i32, %arg1: i32) -> (i32, i32) {
    %c0_i32 = arith.constant 0 : i32
    %c0_i32_0 = arith.constant 0 : i32
    return %c0_i32, %arg0 : i32, i32
  }
}

</mosaic_0001>

<bundles_post_ra>
// kernel: tpu_custom_call.1
= control target key start
LH: loop header
LB: loop body
LE: loop exit
PB: predicated region body
PF: predicated region fallthrough
CT: control target
= control target key end

     0   :  { %7 = vsyncpa [#allocation3], 0  ;;  %s729_s0 = inlined_call_operand.hbm [shape: f32[8,256], index: 0, kind: input, shape index: {}]   ;;  %s730_s1 = inlined_call_operand.hbm [shape: f32[256,128], index: 1, kind: input, shape index: {}]   ;;  %s731_s2 = inlined_call_operand.hbm [shape: f32[8,128], index: 2, kind: output, shape index: {}]  }
   0x1   :  { %8 = vsyncpa [#allocation6], 0 }
   0x2   :  { %10 = vsyncpa [#allocation6 + $0x1], 0 }
   0x3   :  { %11 = vsyncpa [#allocation4], 0  ;;  %s588_s9 = smov 0   ;;  %s590_s10 = smov 0  }
   0x4   :  { %s592_s11 = smov 0   ;;  %s594_s12 = smov 0  }
   0x5   :  { %s596_s13 = smov 0   ;;  %s598_s14 = smov 0  }
   0x6 LB: > { %s326_s15 = sadd.s32 4294967295, %s566_s14   ;;  %s59_s16 = sadd.s32 1, %s554_s11  ;;  %s566_s14 = sphi %s598_s14, %s17_s14   ;;  %s562_s13 = sphi %s596_s13, %s741_s13   ;;  %s558_s12 = sphi %s594_s12, %s740_s12   ;;  %s554_s11 = sphi %s592_s11, %s739_s11   ;;  %s550_s10 = sphi %s590_s10, %s738_s10   ;;  %s546_s9 = sphi %s588_s9, %s737_s9  }
   0x7   : > { %p66_p0 = scmp.ne.s32.totalorder %s554_s11, %s550_s10  ;;  %p67_p1 = scmp.eq.s32.totalorder %s566_s14, 0 }
   0x8   : > { %p72_p2 = scmp.ne.s32.totalorder %s550_s10, %s546_s9  ;;  %p624_p3 = scmp.eq.s32.totalorder %s326_s15, 0 }
   0x9   : > { %p628_p4 = por %p67_p1, %p66_p0  ;;  %p327_p5 = scmp.ge.s32.totalorder %s566_s14, 1 }
   0xa   : > { %p635_p6 = por %p624_p3, %p72_p2  ;;  %p109_p7 = scmp.lt.s32.totalorder %s566_s14, 3 }
   0xb   : > { %s121_s22 = sshll.u32 %s729_s0, 4  ;;  %s568_s24 = smov [#allocation2]   ;;  %s122_s22 = int_to_ptr.hbm [resolvable:$true] %s121_s22 }
   0xc   : > { %p643_p8 = pnand %p327_p5, %p109_p7  ;;  %s123_s25 = sshll.u32 %s568_s24, 4  ;;  %s124_s25 = int_to_ptr.vmem [resolvable:$true] %s123_s25 }
   0xd   : > { %p363_p10 = scmp.lt.s32.totalorder %s566_s14, 2  ;;  %s26_s27 = sadd.s32 1, %s562_s13 }
   0xe   : > { %p354_p9 = pneg %p643_p8  ;;  %p27_p13 = scmp.ge.s32.totalorder %s26_s27, 2 }
   0xf   : > { %p654_p12 = pnand %p363_p10, %p628_p4  ;;  %s134_s28 = sand.u32 1, %s554_s11  }
  0x10   : > { %p355_p11 = pnand %p354_p9, %p624_p3  ;;  %s343_s29 = sshll.u32 %s562_s13, 7 }
  0x11   : > { %s743_s27 = smov (%p27_p13, %s26_s27), 0  ;;  %s330_s30 = sshll.u32 %s134_s28, 7 }
  0x12   : > { %357 = dma.hbm_to_vmem [thread:$0]  (!%p355_p11), %s122_s22, 256, %s124_s25, [#allocation3]  }
  0x13   : > { %s54_s3 = ssub.s32 %s562_s13, %s743_s27  ;;  %s144_s6 = scalar_lea.hbm %s730_s1, %s343_s29 }
  0x14   : > { %p57_p0 = scmp.eq.s32.totalorder %s54_s3, 0  ;;  %s145_s7 = sshll.u32 %s144_s6, 4  ;;  %s146_s7 = int_to_ptr.hbm [resolvable:$true] %s145_s7 }
  0x15   : > { %s138_s8 = scalar_lea.vmem [#allocation5], %s330_s30  ;;  %s135_s20 = scalar_lea.sflag [#allocation6], %s134_s28 }
  0x16   : > { %s147_s9 = sshll.u32 %s138_s8, 4  ;;  %s569_s21 = smov 128   ;;  %s148_s9 = int_to_ptr.vmem [resolvable:$true] %s147_s9 }
  0x17   : > { %s671_s18 = scalar_select %p57_p0, %s554_s11, %s59_s16  }
  0x18   : > { %s570_s22 = smov 8   ;;  %159 = sbr.rel (%p643_p8) target bundleno = 207 (0xcf), region = 28 }
  0x19   : > { %361 = dma.hbm_to_vmem [thread:$0]  (!%p654_p12), %s146_s7, 2048, %s148_s9, %s135_s20, %s569_s21, %s569_s21, %s570_s22  }
  0x1d   : > { %533 = dma.done.wait (%p624_p3), [#allocation3], 256  }
  0x1e   : > { %535 = vsyncadd (%p624_p3), [#allocation3], 4294967040  ;;  %s166_s16 = sand.u32 1, %s550_s10  }
  0x1f   : > { %s335_s24 = sshll.u32 %s166_s16, 7  ;;  %s167_s25 = scalar_lea.sflag [#allocation6], %s166_s16 }
  0x20   : > { %s682_s29 = scalar_lea.vmem [#allocation5], %s335_s24 }
  0x21   : > { %537 = dma.done.wait (%p635_p6), %s167_s25, 2048  }
  0x22   : > { %539 = vsyncadd (%p635_p6), %s167_s25, 4294965248  ;;  %p336_p1 = scmp.ne.s32.totalorder %s558_s12, 0 }
  0x24   : > { %191 = sbr.rel (%p336_p1) target bundleno = 43 (0x2b), region = 40 }
  0x29   : > { %v571_v0 = vmov 0.0  }
  0x2a   : > { %192 = vst [vmem:[#allocation7] sm:$0xff] %v571_v0 }
  0x2b PF: > { %v215_v1 = vld [vmem:[%s682_s29 + $0x78] sm:$0xff]  ;;  %v214_v2 = vld [vmem:[%s682_s29 + $0x70] sm:$0xff]  ;;  %v213_v3 = vld [vmem:[%s682_s29 + $0x68] sm:$0xff]  ;;  %s337_s17 = sshll.u32 %s558_s12, 7  ;;  %s572_s12 = smov [#allocation7]  }
  0x2c   : > { %216 = vmatpush.msra.mxu0 %v215_v1  ;;  %v212_v4 = vld [vmem:[%s682_s29 + $0x60] sm:$0xff]  ;;  %v211_v5 = vld [vmem:[%s682_s29 + $0x58] sm:$0xff]  ;;  %v210_v6 = vld [vmem:[%s682_s29 + $0x50] sm:$0xff]  ;;  %s195_s19 = sshra.s32 %s337_s17, 7  ;;  %s246_s28 = sshll.u32 %s572_s12, 4  ;;  %s247_s28 = int_to_ptr.vmem [resolvable:$true] %s246_s28 }
  0x2d   : > { %v209_v7 = vld [vmem:[%s682_s29 + $0x48] sm:$0xff]  ;;  %v208_v8 = vld [vmem:[%s682_s29 + $0x40] sm:$0xff]  ;;  %v207_v9 = vld [vmem:[%s682_s29 + $0x38] sm:$0xff]  ;;  %s338_s23 = sshll.u32 %s195_s19, 3  ;;  %s248_s4 = sshll.u32 %s731_s2, 4  ;;  %s249_s4 = int_to_ptr.hbm [resolvable:$true] %s248_s4 }
  0x2e   : > { %217 = vmatpush.msra.mxu0 %v214_v2  ;;  %v206_v10 = vld [vmem:[%s682_s29 + $0x30] sm:$0xff]  ;;  %v205_v11 = vld [vmem:[%s682_s29 + $0x28] sm:$0xff]  ;;  %v204_v12 = vld [vmem:[%s682_s29 + $0x20] sm:$0xff]  ;;  %s198_s26 = scalar_lea.vmem [#allocation2], %s338_s23  ;;  %p365_p2 = scmp.eq.s32.totalorder %s326_s15, 1 }
  0x2f   : > { %v203_v13 = vld [vmem:[%s682_s29 + $0x18] sm:$0xff]  ;;  %v202_v14 = vld [vmem:[%s682_s29 + $0x10] sm:$0xff]  ;;  %v201_v15 = vld [vmem:[%s682_s29 + $0x8] sm:$0xff] }
  0x30   : > { %218 = vmatpush.msra.mxu0 %v213_v3  ;;  %v200_v16 = vld [vmem:[%s682_s29] sm:$0xff]  ;;  %v199_v17 = vld [vmem:[%s198_s26] sm:$0xff] }
  0x31   : > { %v194_v18 = vld [vmem:[#allocation7] sm:$0xff] }
  0x32   : > { %219 = vmatpush.msra.mxu0 %v212_v4 }
  0x34   : > { %220 = vmatpush.msra.mxu0 %v211_v5 }
  0x36   : > { %221 = vmatpush.msra.mxu0 %v210_v6 }
  0x38   : > { %222 = vmatpush.msra.mxu0 %v209_v7 }
  0x3a   : > { %223 = vmatpush.msra.mxu0 %v208_v8 }
  0x3c   : > { %224 = vmatpush.msra.mxu0 %v207_v9 }
  0x3e   : > { %225 = vmatpush.msra.mxu0 %v206_v10 }
  0x40   : > { %226 = vmatpush.msra.mxu0 %v205_v11 }
  0x42   : > { %227 = vmatpush.msra.mxu0 %v204_v12 }
  0x44   : > { %228 = vmatpush.msra.mxu0 %v203_v13 }
  0x46   : > { %229 = vmatpush.msra.mxu0 %v202_v14 }
  0x48   : > { %230 = vmatpush.msra.mxu0 %v201_v15 }
  0x4a   : > { %231 = vmatpush.msra.mxu0 %v200_v16 }
  0x4b   : > { %232 = vmatmul.f32.vlgmr.msra.gmra.mxu0 %v199_v17 }
  0xc8   : > { %v233_v19 = vpop.f32.mrf.mxu0 }
  0xc9   : > { %v236_v20 = vadd.f32 %v233_v19, %v194_v18 }
  0xcb   : > { %237 = vst [vmem:[#allocation7] sm:$0xff] %v236_v20 }
  0xcc   : > { %351 = dma.vmem_to_hbm [thread:$0]  (%p365_p2), %s247_s28, 128, %s249_s4, [#allocation4]  }
  0xcd   : > { %541 = dma.done.wait (%p365_p2), [#allocation4], 128  }
  0xce   : > { %543 = vsyncadd (%p365_p2), [#allocation4], 4294967168 }
  0xcf PF: > { %s17_s14 = sadd.s32 1, %s566_s14   ;;  %s737_s9 = smov %s550_s10 }
  0xd0   : > { %p14_p3 = scmp.ge.s32.totalorder %s17_s14, 4   ;;  %s738_s10 = smov %s554_s11 }
  0xd1   : > { %s739_s11 = smov %s671_s18  ;;  %s740_s12 = smov %s562_s13 }
  0xd2   : > { %s741_s13 = smov %s743_s27  ;;  %16 = sbr.rel (!%p14_p3) target bundleno = 6 (0x6), region = 76 }
  0xd7   :  { %262 = vsyncpa [#allocation3], 1 }
  0xd8   :  { %264 = vsyncpa [#allocation3 + $0x1], 1 }
  0xd9   :  { %265 = vsyncpa [#allocation6], 1 }
  0xda   :  { %267 = vsyncpa [#allocation6 + $0x1], 1 }
  0xdb   :  { %268 = vsyncpa [#allocation4], 1 }
  0xdc   :  { %270 = vsyncpa [#allocation4 + $0x1], 1 }

</bundles_post_ra>
